<compile_context>
chip_gen: v5e
topology: v5e:2x2
jax: 0.10.0
libtpu: 0.0.40
codegen_flags: <defaults>
</compile_context>

<pallas_src>
import math
import functools

import jax
import jax.numpy as jnp
from jax.experimental import pallas as pl
from jax.experimental.pallas import tpu as pltpu


# ----------------------------- small helpers -----------------------------

def _round_up(x, m):
    return ((x + m - 1) // m) * m


_NB = 8  # padded "branch" width (3 real branches: pi / mu / sigma)


# ------------------------------ Pallas kernel ------------------------------

def _mdn_kernel(x_ref,
                w1_ref, b1_ref,
                wd_ref, bd_ref,
                m_ref, base_ref,
                fold_ref,
                wh_ref, bh_ref,
                out_ref, *, num_gaussians, output_dim, pi_sigmoid):
    x = x_ref[...]                                                   # (tb, 2*in+sel)

    # Layer 1: block-diagonal fused weight -> lanes [0:3H]=prior, [3H:6H]=info2,
    # [6H:9H]=attention-L1 hidden.
    h1 = jnp.dot(x, w1_ref[...], preferred_element_type=jnp.float32) + b1_ref[...]

    # Attention logit difference z1 - z0 per branch (rank-3 projection).  Wd has
    # zero rows outside the attention lanes, so the ReLU on prior/info2 lanes is
    # harmless.  sigmoid(z1-z0) == softmax([z0,z1])[:, 1] exactly.
    z = jnp.dot(jnp.maximum(h1, 0.0), wd_ref[...],
                preferred_element_type=jnp.float32) + bd_ref[...]    # (tb, _NB)
    w_info2 = 1.0 / (1.0 + jnp.exp(-z))

    # Broadcast per-branch blend weights back to all 9H lanes:
    # prior lanes get (1 - w), info2 lanes get w, attention lanes get 0.
    gate = jnp.dot(w_info2, m_ref[...],
                   preferred_element_type=jnp.float32) + base_ref[...]   # (tb, 9H)

    # Selective blend, folded down to 3H lanes (prior-gated + info2-gated).
    blend = jnp.dot(h1 * gate, fold_ref[...],
                    preferred_element_type=jnp.float32)              # (tb, 3H)

    # Block-diagonal heads on the ReLU'd blended hidden (non_linear = ReLU),
    # zero-padded to a lane-dense 128-multiple output width.
    head = jnp.dot(jnp.maximum(blend, 0.0), wh_ref[...],
                   preferred_element_type=jnp.float32) + bh_ref[...]  # (tb, out_pad)

    ng = num_gaussians
    ngod = num_gaussians * output_dim
    out_w = ng + 2 * ngod

    lane = jax.lax.broadcasted_iota(jnp.int32, head.shape, 1)
    is_pi = lane < ng
    is_mu = (lane >= ng) & (lane < ng + ngod)
    is_sg = (lane >= ng + ngod) & (lane < out_w)

    if pi_sigmoid:
        # num_gaussians == 2: pi logit differences were folded into the head
        # weights, so softmax == elementwise sigmoid (no XLU reductions).
        pi_val = 1.0 / (1.0 + jnp.exp(-head)) + 1e-4
    else:
        masked = jnp.where(is_pi, head, -jnp.inf)
        mmax = jnp.max(masked, axis=-1, keepdims=True)
        e = jnp.where(is_pi, jnp.exp(masked - mmax), 0.0)
        pi_val = e / jnp.sum(e, axis=-1, keepdims=True) + 1e-4

    mu_val = jnp.clip(head, 0.0, 1.0)
    sg_val = jnp.clip(jnp.exp(head) + 1e-4, 0.0, 1.0)

    out_ref[...] = jnp.where(is_pi, pi_val,
                             jnp.where(is_mu, mu_val,
                                       jnp.where(is_sg, sg_val, 0.0)))


# --------------------------- param init / packing ---------------------------

def init_params(key, input_dim, sel_dim, hidden, output_dim, num_gaussians):
    """Deterministic PyTorch-style (uniform +-1/sqrt(fan_in)) linear params."""
    def linear_init(k, fan_in, fan_out):
        k1, k2 = jax.random.split(k)
        bound = 1.0 / math.sqrt(fan_in)
        w = jax.random.uniform(k1, (fan_in, fan_out), jnp.float32, -bound, bound)
        b = jax.random.uniform(k2, (1, fan_out), jnp.float32, -bound, bound)
        return w, b

    keys = jax.random.split(key, 15)
    params = []
    # prior embeddings (pi, mu, sigma)
    for i in range(3):
        params.extend(linear_init(keys[i], input_dim, hidden))
    # attention stacks (pi, mu, sigma): (sel_dim->hidden), (hidden->2)
    for i in range(3):
        params.extend(linear_init(keys[3 + 2 * i], sel_dim, hidden))
        params.extend(linear_init(keys[4 + 2 * i], hidden, 2))
    # info2 embeddings (pi, mu, sigma)
    for i in range(3):
        params.extend(linear_init(keys[9 + i], input_dim, hidden))
    # heads: pi (hidden->NG), mu (hidden->OD*NG), sigma (hidden->OD*NG)
    params.extend(linear_init(keys[12], hidden, num_gaussians))
    params.extend(linear_init(keys[13], hidden, output_dim * num_gaussians))
    params.extend(linear_init(keys[14], hidden, output_dim * num_gaussians))
    return tuple(params)


def _pack_params(params, input_dim, sel_dim, hidden, num_gaussians, output_dim):
    """Fuse the 15 per-branch linears into 5 block-structured matmuls."""
    (wpp, bpp, wpm, bpm, wps, bps,
     wa1p, ba1p, wa2p, ba2p,
     wa1m, ba1m, wa2m, ba2m,
     wa1s, ba1s, wa2s, ba2s,
     wep, bep, wem, bem, wes, bes,
     whpi, bhpi, whmu, bhmu, whsg, bhsg) = params
    H = hidden
    ng = num_gaussians
    ngod = num_gaussians * output_dim
    out_w = ng + 2 * ngod
    out_pad = _round_up(out_w, 128)
    H3, H9 = 3 * H, 9 * H
    d_in = 2 * input_dim + sel_dim

    # Fused first layer over [x_info1 | x_info2 | sel].
    w1 = jnp.zeros((d_in, H9), jnp.float32)
    w1 = w1.at[0:input_dim, 0:H3].set(jnp.concatenate([wpp, wpm, wps], axis=1))
    w1 = w1.at[input_dim:2 * input_dim, H3:2 * H3].set(
        jnp.concatenate([wep, wem, wes], axis=1))
    w1 = w1.at[2 * input_dim:, 2 * H3:].set(
        jnp.concatenate([wa1p, wa1m, wa1s], axis=1))
    b1 = jnp.concatenate([bpp, bpm, bps, bep, bem, bes, ba1p, ba1m, ba1s], axis=1)

    # Attention L2 as a per-branch logit-difference projection (9H -> _NB).
    wd = jnp.zeros((H9, _NB), jnp.float32)
    bd = jnp.zeros((1, _NB), jnp.float32)
    for i, (wa2, ba2) in enumerate(((wa2p, ba2p), (wa2m, ba2m), (wa2s, ba2s))):
        wd = wd.at[2 * H3 + i * H:2 * H3 + (i + 1) * H, i].set(wa2[:, 1] - wa2[:, 0])
        bd = bd.at[0, i].set(ba2[0, 1] - ba2[0, 0])

    # Broadcast: per-branch info2 weight w -> gate over all 9H lanes
    # (prior lanes: 1 - w, info2 lanes: w, attention lanes: 0).
    m_bcast = jnp.zeros((_NB, H9), jnp.float32)
    base = jnp.zeros((1, H9), jnp.float32)
    for i in range(3):
        m_bcast = m_bcast.at[i, i * H:(i + 1) * H].set(-1.0)
        m_bcast = m_bcast.at[i, H3 + i * H:H3 + (i + 1) * H].set(1.0)
    base = base.at[0, 0:H3].set(1.0)

    # Fold: sum the prior-gated and info2-gated lane blocks down to 3H.
    eye3h = jnp.eye(H3, dtype=jnp.float32)
    fold = jnp.concatenate([eye3h, eye3h, jnp.zeros((H3, H3), jnp.float32)], axis=0)

    # Block-diagonal heads, lane-padded to out_pad.  For ng == 2, fold the
    # 2-way pi softmax into logit-difference columns (sigmoid in-kernel).
    pi_sigmoid = (ng == 2)
    if pi_sigmoid:
        whpi_eff = jnp.stack([whpi[:, 0] - whpi[:, 1], whpi[:, 1] - whpi[:, 0]], axis=1)
        bhpi_eff = jnp.stack([bhpi[0, 0] - bhpi[0, 1], bhpi[0, 1] - bhpi[0, 0]])[None, :]
    else:
        whpi_eff, bhpi_eff = whpi, bhpi
    w_head = jnp.zeros((H3, out_pad), jnp.float32)
    w_head = w_head.at[0:H, 0:ng].set(whpi_eff)
    w_head = w_head.at[H:2 * H, ng:ng + ngod].set(whmu)
    w_head = w_head.at[2 * H:3 * H, ng + ngod:out_w].set(whsg)
    b_head = jnp.zeros((1, out_pad), jnp.float32)
    b_head = b_head.at[:, 0:ng].set(bhpi_eff)
    b_head = b_head.at[:, ng:ng + ngod].set(bhmu)
    b_head = b_head.at[:, ng + ngod:out_w].set(bhsg)

    return (w1, b1, wd, bd, m_bcast, base, fold, w_head, b_head), pi_sigmoid


# --------------------------------- wrapper ---------------------------------

@functools.partial(jax.jit,
                   static_argnames=("num_gaussians", "output_dim", "block_b",
                                    "core_parallel"))
def selective_mdn_forward(x_info1, x_info2, sel, params, *,
                          num_gaussians, output_dim, block_b=2048,
                          core_parallel=False):
    B, input_dim = x_info1.shape
    sel_dim = sel.shape[1]
    hidden = params[0].shape[1]
    H3, H9 = 3 * hidden, 9 * hidden
    ng = num_gaussians
    ngod = num_gaussians * output_dim
    out_w = ng + 2 * ngod
    out_pad = _round_up(out_w, 128)

    packed, pi_sigmoid = _pack_params(params, input_dim, sel_dim, hidden,
                                      num_gaussians, output_dim)

    # One fused activation stream -> single per-step input DMA.
    act = jnp.concatenate([x_info1, x_info2, sel], axis=1)
    d_act = act.shape[1]

    # Batch tile: multiple of 8 (f32 sublane); pad batch to a multiple of tb.
    tb = min(block_b, _round_up(B, 8))
    b_pad = _round_up(B, tb)
    if b_pad != B:
        act = jnp.pad(act, ((0, b_pad - B), (0, 0)))

    grid = (b_pad // tb,)

    def res_spec(shape):
        # Full-array block, constant index map -> stays VMEM-resident.
        return pl.BlockSpec(shape, lambda i: (0, 0))

    w1, b1, wd, bd, m_bcast, base, fold, w_head, b_head = packed
    in_specs = [
        pl.BlockSpec((tb, d_act), lambda i: (i, 0)),
        res_spec(w1.shape), res_spec(b1.shape),
        res_spec(wd.shape), res_spec(bd.shape),
        res_spec(m_bcast.shape), res_spec(base.shape),
        res_spec(fold.shape),
        res_spec(w_head.shape), res_spec(b_head.shape),
    ]

    flops = 2 * b_pad * (d_act * H9 + H9 * _NB + _NB * H9 + H9 * H3 + H3 * out_pad)
    transcendentals = b_pad * (_NB + 2 * out_pad)
    weight_bytes = sum(int(w.size) * 4 for w in packed)
    bytes_accessed = 4 * b_pad * (d_act + out_pad) + weight_bytes

    # On v7x, core_parallel=True shards the batch grid across both TensorCores.
    sem = (pltpu.CORE_PARALLEL,) if core_parallel else ("parallel",)
    # NOTE: VMEM footprint is ~4 MiB at tb=2048; no vmem_limit_bytes override
    # needed on any generation at current sizes.

    kernel = functools.partial(_mdn_kernel, num_gaussians=num_gaussians,
                               output_dim=output_dim, pi_sigmoid=pi_sigmoid)

    out = pl.pallas_call(
        kernel,
        out_shape=jax.ShapeDtypeStruct((b_pad, out_pad), jnp.float32),
        grid=grid,
        in_specs=in_specs,
        out_specs=pl.BlockSpec((tb, out_pad), lambda i: (i, 0)),
        compiler_params=pltpu.CompilerParams(dimension_semantics=sem),
        cost_estimate=pl.CostEstimate(flops=flops,
                                      transcendentals=transcendentals,
                                      bytes_accessed=bytes_accessed),
    )(act, *packed)

    out = out[:B]
    pi = out[:, 0:ng]
    mu = out[:, ng:ng + ngod].reshape(B, ng, output_dim)
    sigma = out[:, ng + ngod:out_w].reshape(B, ng, output_dim)
    return pi, mu, sigma


# ------------------------------ pure-JAX reference ------------------------------

def ref_forward(x1, x2, sel, params, num_gaussians, output_dim):
    (wpp, bpp, wpm, bpm, wps, bps,
     wa1p, ba1p, wa2p, ba2p,
     wa1m, ba1m, wa2m, ba2m,
     wa1s, ba1s, wa2s, ba2s,
     wep, bep, wem, bem, wes, bes,
     whpi, bhpi, whmu, bhmu, whsg, bhsg) = params
    relu = jax.nn.relu
    sm = lambda z: jax.nn.softmax(z, axis=-1)

    pi_h0 = x1 @ wpp + bpp
    mu_h0 = x1 @ wpm + bpm
    sg_h0 = x1 @ wps + bps

    pi_w = sm(relu(sel @ wa1p + ba1p) @ wa2p + ba2p)
    mu_w = sm(relu(sel @ wa1m + ba1m) @ wa2m + ba2m)
    sg_w = sm(relu(sel @ wa1s + ba1s) @ wa2s + ba2s)

    pi_hidden = pi_h0 * pi_w[:, 0:1] + (x2 @ wep + bep) * pi_w[:, 1:2]
    mu_hidden = mu_h0 * mu_w[:, 0:1] + (x2 @ wem + bem) * mu_w[:, 1:2]
    sg_hidden = sg_h0 * sg_w[:, 0:1] + (x2 @ wes + bes) * sg_w[:, 1:2]

    B = x1.shape[0]
    pi = sm(relu(pi_hidden) @ whpi + bhpi) + 1e-4
    mu = jnp.clip((relu(mu_hidden) @ whmu + bhmu).reshape(B, num_gaussians, output_dim),
                  0.0, 1.0)
    sg = jnp.clip(jnp.exp(relu(sg_hidden) @ whsg + bhsg).reshape(B, num_gaussians, output_dim)
                  + 1e-4, 0.0, 1.0)
    return pi, mu, sg


# ----------------------------------- main -----------------------------------

if __name__ == "__main__":
    B = 8
    INPUT_DIM = 8
    SEL_DIM = 5
    HIDDEN = 16
    OUTPUT_DIM = 2
    NUM_GAUSSIANS = 2

    key = jax.random.PRNGKey(0)
    kx1, kx2, ksel, kparams = jax.random.split(key, 4)
    x_info1 = jax.random.normal(kx1, (B, INPUT_DIM), jnp.float32)
    x_info2 = jax.random.normal(kx2, (B, INPUT_DIM), jnp.float32)
    sel = jax.random.normal(ksel, (B, SEL_DIM), jnp.float32)

    params = init_params(kparams, INPUT_DIM, SEL_DIM, HIDDEN, OUTPUT_DIM, NUM_GAUSSIANS)

    pi, mu, sigma = selective_mdn_forward(
        x_info1, x_info2, sel, params,
        num_gaussians=NUM_GAUSSIANS, output_dim=OUTPUT_DIM)
    jax.block_until_ready((pi, mu, sigma))

    pi_ref, mu_ref, sg_ref = ref_forward(
        x_info1, x_info2, sel, params, NUM_GAUSSIANS, OUTPUT_DIM)

    assert pi.shape == (B, NUM_GAUSSIANS)
    assert mu.shape == (B, NUM_GAUSSIANS, OUTPUT_DIM)
    assert sigma.shape == (B, NUM_GAUSSIANS, OUTPUT_DIM)
    assert jnp.allclose(pi, pi_ref, atol=1e-5, rtol=1e-5)
    assert jnp.allclose(mu, mu_ref, atol=1e-5, rtol=1e-5)
    assert jnp.allclose(sigma, sg_ref, atol=1e-5, rtol=1e-5)

    print("KERNEL_OK")
</pallas_src>

<mosaic_0001>
module attributes {stable_mosaic.version = 11 : i64} {
  func.func @_mdn_kernel(%arg0: i32, %arg1: memref<8x21xf32, #tpu.memory_space<vmem>>, %arg2: memref<21x144xf32, #tpu.memory_space<vmem>>, %arg3: memref<1x144xf32, #tpu.memory_space<vmem>>, %arg4: memref<144x8xf32, #tpu.memory_space<vmem>>, %arg5: memref<1x8xf32, #tpu.memory_space<vmem>>, %arg6: memref<8x144xf32, #tpu.memory_space<vmem>>, %arg7: memref<1x144xf32, #tpu.memory_space<vmem>>, %arg8: memref<144x48xf32, #tpu.memory_space<vmem>>, %arg9: memref<48x128xf32, #tpu.memory_space<vmem>>, %arg10: memref<1x128xf32, #tpu.memory_space<vmem>>, %arg11: memref<8x128xf32, #tpu.memory_space<vmem>>) attributes {dimension_semantics = [#tpu.dimension_semantics<parallel>], iteration_bounds = array<i64: 1>, scalar_prefetch = 0 : i64, scratch_operands = 0 : i64, tpu.core_type = #tpu.core_type<tc>, window_params = [{transform_indices = @transform_0, window_bounds = array<i64: 8, 21>}, {pipeline_mode = #tpu.pipeline_mode<synchronous>, transform_indices = @transform_1, window_bounds = array<i64: 21, 144>}, {pipeline_mode = #tpu.pipeline_mode<synchronous>, transform_indices = @transform_2, window_bounds = array<i64: 1, 144>}, {pipeline_mode = #tpu.pipeline_mode<synchronous>, transform_indices = @transform_3, window_bounds = array<i64: 144, 8>}, {pipeline_mode = #tpu.pipeline_mode<synchronous>, transform_indices = @transform_4, window_bounds = array<i64: 1, 8>}, {pipeline_mode = #tpu.pipeline_mode<synchronous>, transform_indices = @transform_5, window_bounds = array<i64: 8, 144>}, {pipeline_mode = #tpu.pipeline_mode<synchronous>, transform_indices = @transform_6, window_bounds = array<i64: 1, 144>}, {pipeline_mode = #tpu.pipeline_mode<synchronous>, transform_indices = @transform_7, window_bounds = array<i64: 144, 48>}, {pipeline_mode = #tpu.pipeline_mode<synchronous>, transform_indices = @transform_8, window_bounds = array<i64: 48, 128>}, {pipeline_mode = #tpu.pipeline_mode<synchronous>, transform_indices = @transform_9, window_bounds = array<i64: 1, 128>}, {transform_indices = @transform_10, window_bounds = array<i64: 8, 128>}]} {
    %c0 = arith.constant 0 : index
    %c0_0 = arith.constant 0 : index
    %0 = vector.load %arg1[%c0, %c0_0] : memref<8x21xf32, #tpu.memory_space<vmem>>, vector<8x21xf32>
    %c0_1 = arith.constant 0 : index
    %c0_2 = arith.constant 0 : index
    %1 = vector.load %arg2[%c0_1, %c0_2] : memref<21x144xf32, #tpu.memory_space<vmem>>, vector<21x144xf32>
    %cst = arith.constant dense<0.000000e+00> : vector<8x144xf32>
    %2 = tpu.matmul %0, %1, %cst {dimension_numbers = #tpu.dot_dimension_numbers<[1], [0], [0], [1], [0, 0, 1, 1], [], []>} : vector<8x21xf32>, vector<21x144xf32>, vector<8x144xf32> -> vector<8x144xf32>
    %c0_3 = arith.constant 0 : index
    %c0_4 = arith.constant 0 : index
    %3 = vector.load %arg3[%c0_3, %c0_4] : memref<1x144xf32, #tpu.memory_space<vmem>>, vector<1x144xf32>
    %4 = vector.broadcast %3 : vector<1x144xf32> to vector<8x144xf32>
    %5 = arith.addf %2, %4 : vector<8x144xf32>
    %cst_5 = arith.constant 0.000000e+00 : f32
    %6 = vector.broadcast %cst_5 : f32 to vector<8x144xf32>
    %7 = arith.maximumf %5, %6 : vector<8x144xf32>
    %c0_6 = arith.constant 0 : index
    %c0_7 = arith.constant 0 : index
    %8 = vector.load %arg4[%c0_6, %c0_7] : memref<144x8xf32, #tpu.memory_space<vmem>>, vector<144x8xf32>
    %cst_8 = arith.constant dense<0.000000e+00> : vector<8x8xf32>
    %9 = tpu.matmul %7, %8, %cst_8 {dimension_numbers = #tpu.dot_dimension_numbers<[1], [0], [0], [1], [0, 0, 1, 1], [], []>} : vector<8x144xf32>, vector<144x8xf32>, vector<8x8xf32> -> vector<8x8xf32>
    %c0_9 = arith.constant 0 : index
    %c0_10 = arith.constant 0 : index
    %10 = vector.load %arg5[%c0_9, %c0_10] : memref<1x8xf32, #tpu.memory_space<vmem>>, vector<1x8xf32>
    %11 = vector.broadcast %10 : vector<1x8xf32> to vector<8x8xf32>
    %12 = arith.addf %9, %11 : vector<8x8xf32>
    %cst_11 = arith.constant 0.000000e+00 : f32
    %13 = vector.broadcast %cst_11 : f32 to vector<8x8xf32>
    %14 = arith.subf %13, %12 : vector<8x8xf32>
    %15 = math.exp %14 : vector<8x8xf32>
    %cst_12 = arith.constant 1.000000e+00 : f32
    %16 = vector.broadcast %cst_12 : f32 to vector<8x8xf32>
    %17 = arith.addf %16, %15 : vector<8x8xf32>
    %cst_13 = arith.constant 1.000000e+00 : f32
    %18 = vector.broadcast %cst_13 : f32 to vector<8x8xf32>
    %19 = arith.divf %18, %17 : vector<8x8xf32>
    %c0_14 = arith.constant 0 : index
    %c0_15 = arith.constant 0 : index
    %20 = vector.load %arg6[%c0_14, %c0_15] : memref<8x144xf32, #tpu.memory_space<vmem>>, vector<8x144xf32>
    %cst_16 = arith.constant dense<0.000000e+00> : vector<8x144xf32>
    %21 = tpu.matmul %19, %20, %cst_16 {dimension_numbers = #tpu.dot_dimension_numbers<[1], [0], [0], [1], [0, 0, 1, 1], [], []>} : vector<8x8xf32>, vector<8x144xf32>, vector<8x144xf32> -> vector<8x144xf32>
    %c0_17 = arith.constant 0 : index
    %c0_18 = arith.constant 0 : index
    %22 = vector.load %arg7[%c0_17, %c0_18] : memref<1x144xf32, #tpu.memory_space<vmem>>, vector<1x144xf32>
    %23 = vector.broadcast %22 : vector<1x144xf32> to vector<8x144xf32>
    %24 = arith.addf %21, %23 : vector<8x144xf32>
    %25 = arith.mulf %5, %24 : vector<8x144xf32>
    %c0_19 = arith.constant 0 : index
    %c0_20 = arith.constant 0 : index
    %26 = vector.load %arg8[%c0_19, %c0_20] : memref<144x48xf32, #tpu.memory_space<vmem>>, vector<144x48xf32>
    %cst_21 = arith.constant dense<0.000000e+00> : vector<8x48xf32>
    %27 = tpu.matmul %25, %26, %cst_21 {dimension_numbers = #tpu.dot_dimension_numbers<[1], [0], [0], [1], [0, 0, 1, 1], [], []>} : vector<8x144xf32>, vector<144x48xf32>, vector<8x48xf32> -> vector<8x48xf32>
    %cst_22 = arith.constant 0.000000e+00 : f32
    %28 = vector.broadcast %cst_22 : f32 to vector<8x48xf32>
    %29 = arith.maximumf %27, %28 : vector<8x48xf32>
    %c0_23 = arith.constant 0 : index
    %c0_24 = arith.constant 0 : index
    %30 = vector.load %arg9[%c0_23, %c0_24] : memref<48x128xf32, #tpu.memory_space<vmem>>, vector<48x128xf32>
    %cst_25 = arith.constant dense<0.000000e+00> : vector<8x128xf32>
    %31 = tpu.matmul %29, %30, %cst_25 {dimension_numbers = #tpu.dot_dimension_numbers<[1], [0], [0], [1], [0, 0, 1, 1], [], []>} : vector<8x48xf32>, vector<48x128xf32>, vector<8x128xf32> -> vector<8x128xf32>
    %c0_26 = arith.constant 0 : index
    %c0_27 = arith.constant 0 : index
    %32 = vector.load %arg10[%c0_26, %c0_27] : memref<1x128xf32, #tpu.memory_space<vmem>>, vector<1x128xf32>
    %33 = vector.broadcast %32 : vector<1x128xf32> to vector<8x128xf32>
    %34 = arith.addf %31, %33 : vector<8x128xf32>
    %35 = tpu.iota {dimensions = array<i32: 1>} : vector<8x128xi32>
    %c2_i32 = arith.constant 2 : i32
    %36 = vector.broadcast %c2_i32 : i32 to vector<8x128xi32>
    %37 = arith.cmpi slt, %35, %36 : vector<8x128xi32>
    %c2_i32_28 = arith.constant 2 : i32
    %38 = vector.broadcast %c2_i32_28 : i32 to vector<8x128xi32>
    %39 = arith.cmpi sge, %35, %38 : vector<8x128xi32>
    %c6_i32 = arith.constant 6 : i32
    %40 = vector.broadcast %c6_i32 : i32 to vector<8x128xi32>
    %41 = arith.cmpi slt, %35, %40 : vector<8x128xi32>
    %42 = arith.andi %39, %41 : vector<8x128xi1>
    %c6_i32_29 = arith.constant 6 : i32
    %43 = vector.broadcast %c6_i32_29 : i32 to vector<8x128xi32>
    %44 = arith.cmpi sge, %35, %43 : vector<8x128xi32>
    %c10_i32 = arith.constant 10 : i32
    %45 = vector.broadcast %c10_i32 : i32 to vector<8x128xi32>
    %46 = arith.cmpi slt, %35, %45 : vector<8x128xi32>
    %47 = arith.andi %44, %46 : vector<8x128xi1>
    %cst_30 = arith.constant 0.000000e+00 : f32
    %48 = vector.broadcast %cst_30 : f32 to vector<8x128xf32>
    %49 = arith.subf %48, %34 : vector<8x128xf32>
    %50 = math.exp %49 : vector<8x128xf32>
    %cst_31 = arith.constant 1.000000e+00 : f32
    %51 = vector.broadcast %cst_31 : f32 to vector<8x128xf32>
    %52 = arith.addf %51, %50 : vector<8x128xf32>
    %cst_32 = arith.constant 1.000000e+00 : f32
    %53 = vector.broadcast %cst_32 : f32 to vector<8x128xf32>
    %54 = arith.divf %53, %52 : vector<8x128xf32>
    %cst_33 = arith.constant 9.99999974E-5 : f32
    %55 = vector.broadcast %cst_33 : f32 to vector<8x128xf32>
    %56 = arith.addf %54, %55 : vector<8x128xf32>
    %cst_34 = arith.constant 0.000000e+00 : f32
    %cst_35 = arith.constant 1.000000e+00 : f32
    %57 = vector.broadcast %cst_34 : f32 to vector<8x128xf32>
    %58 = arith.maximumf %57, %34 : vector<8x128xf32>
    %59 = vector.broadcast %cst_35 : f32 to vector<8x128xf32>
    %60 = arith.minimumf %59, %58 : vector<8x128xf32>
    %61 = math.exp %34 : vector<8x128xf32>
    %cst_36 = arith.constant 9.99999974E-5 : f32
    %62 = vector.broadcast %cst_36 : f32 to vector<8x128xf32>
    %63 = arith.addf %61, %62 : vector<8x128xf32>
    %cst_37 = arith.constant 0.000000e+00 : f32
    %cst_38 = arith.constant 1.000000e+00 : f32
    %64 = vector.broadcast %cst_37 : f32 to vector<8x128xf32>
    %65 = arith.maximumf %64, %63 : vector<8x128xf32>
    %66 = vector.broadcast %cst_38 : f32 to vector<8x128xf32>
    %67 = arith.minimumf %66, %65 : vector<8x128xf32>
    %cst_39 = arith.constant 0.000000e+00 : f32
    %68 = vector.broadcast %cst_39 : f32 to vector<8x128xf32>
    %69 = arith.select %47, %67, %68 : vector<8x128xi1>, vector<8x128xf32>
    %70 = arith.select %42, %60, %69 : vector<8x128xi1>, vector<8x128xf32>
    %71 = arith.select %37, %56, %70 : vector<8x128xi1>, vector<8x128xf32>
    %c0_40 = arith.constant 0 : index
    %c0_41 = arith.constant 0 : index
    %72 = vector.load %arg11[%c0_40, %c0_41] : memref<8x128xf32, #tpu.memory_space<vmem>>, vector<8x128xf32>
    tpu.vector_store %arg11[%c0_40, %c0_41], %71 {strides = array<i32>} : memref<8x128xf32, #tpu.memory_space<vmem>>, vector<8x128xf32>,
    return
  }
  func.func @transform_0(%arg0: i32) -> (i32, i32) {
    %c0_i32 = arith.constant 0 : i32
    %c0_i32_0 = arith.constant 0 : i32
    return %arg0, %c0_i32 : i32, i32
  }
  func.func @transform_1(%arg0: i32) -> (i32, i32) {
    %c0_i32 = arith.constant 0 : i32
    %c0_i32_0 = arith.constant 0 : i32
    %c0_i32_1 = arith.constant 0 : i32
    return %c0_i32, %c0_i32_0 : i32, i32
  }
  func.func @transform_2(%arg0: i32) -> (i32, i32) {
    %c0_i32 = arith.constant 0 : i32
    %c0_i32_0 = arith.constant 0 : i32
    %c0_i32_1 = arith.constant 0 : i32
    return %c0_i32, %c0_i32_0 : i32, i32
  }
  func.func @transform_3(%arg0: i32) -> (i32, i32) {
    %c0_i32 = arith.constant 0 : i32
    %c0_i32_0 = arith.constant 0 : i32
    %c0_i32_1 = arith.constant 0 : i32
    return %c0_i32, %c0_i32_0 : i32, i32
  }
  func.func @transform_4(%arg0: i32) -> (i32, i32) {
    %c0_i32 = arith.constant 0 : i32
    %c0_i32_0 = arith.constant 0 : i32
    %c0_i32_1 = arith.constant 0 : i32
    return %c0_i32, %c0_i32_0 : i32, i32
  }
  func.func @transform_5(%arg0: i32) -> (i32, i32) {
    %c0_i32 = arith.constant 0 : i32
    %c0_i32_0 = arith.constant 0 : i32
    %c0_i32_1 = arith.constant 0 : i32
    return %c0_i32, %c0_i32_0 : i32, i32
  }
  func.func @transform_6(%arg0: i32) -> (i32, i32) {
    %c0_i32 = arith.constant 0 : i32
    %c0_i32_0 = arith.constant 0 : i32
    %c0_i32_1 = arith.constant 0 : i32
    return %c0_i32, %c0_i32_0 : i32, i32
  }
  func.func @transform_7(%arg0: i32) -> (i32, i32) {
    %c0_i32 = arith.constant 0 : i32
    %c0_i32_0 = arith.constant 0 : i32
    %c0_i32_1 = arith.constant 0 : i32
    return %c0_i32, %c0_i32_0 : i32, i32
  }
  func.func @transform_8(%arg0: i32) -> (i32, i32) {
    %c0_i32 = arith.constant 0 : i32
    %c0_i32_0 = arith.constant 0 : i32
    %c0_i32_1 = arith.constant 0 : i32
    return %c0_i32, %c0_i32_0 : i32, i32
  }
  func.func @transform_9(%arg0: i32) -> (i32, i32) {
    %c0_i32 = arith.constant 0 : i32
    %c0_i32_0 = arith.constant 0 : i32
    %c0_i32_1 = arith.constant 0 : i32
    return %c0_i32, %c0_i32_0 : i32, i32
  }
  func.func @transform_10(%arg0: i32) -> (i32, i32) {
    %c0_i32 = arith.constant 0 : i32
    %c0_i32_0 = arith.constant 0 : i32
    return %arg0, %c0_i32 : i32, i32
  }
}

</mosaic_0001>

<bundles_post_ra>
// kernel: selective_mdn_forward.1
= control target key start
LH: loop header
LB: loop body
LE: loop exit
PB: predicated region body
PF: predicated region fallthrough
CT: control target
= control target key end

     0   :  { %vm52_vm0 = vcmask 1044480   ;;  %vm48_vm1 = vcmask 171008   ;;  %vm123_vm2 = vcmask 130048   ;;  %vm194_vm6 = vcmask 64512   ;;  %s640_s1 = inlined_call_operand.vmem [shape: f32[21,144], index: 1, kind: input, shape index: {}]   ;;  %s641_s3 = inlined_call_operand.vmem [shape: f32[144,8], index: 3, kind: input, shape index: {}]   ;;  %s642_s0 = inlined_call_operand.vmem [shape: f32[8,21], index: 0, kind: input, shape index: {}]   ;;  %s643_s4 = inlined_call_operand.vmem [shape: f32[1,8], index: 4, kind: input, shape index: {}]   ;;  %s644_s2 = inlined_call_operand.vmem [shape: f32[1,144], index: 2, kind: input, shape index: {}]   ;;  %s645_s5 = inlined_call_operand.vmem [shape: f32[8,144], index: 5, kind: input, shape index: {}]   ;;  %s646_s7 = inlined_call_operand.vmem [shape: f32[144,48], index: 7, kind: input, shape index: {}]   ;;  %s647_s8 = inlined_call_operand.vmem [shape: f32[48,128], index: 8, kind: input, shape index: {}]   ;;  %s648_s6 = inlined_call_operand.vmem [shape: f32[1,144], index: 6, kind: input, shape index: {}]   ;;  %s649_s9 = inlined_call_operand.vmem [shape: f32[1,128], index: 9, kind: input, shape index: {}]   ;;  %s650_s10 = inlined_call_operand.vmem [shape: f32[8,128], index: 10, kind: output, shape index: {}]  }
   0x1   :  { %v41_v0 = vld [vmem:[%s640_s1 + $0x28] sm:$0x1f]  ;;  %v39_v1 = vld [vmem:[%s640_s1 + $0x18] sm:$0xff]  ;;  %v40_v2 = vld [vmem:[%s640_s1 + $0x20] sm:$0x1f]  ;;  %vm312_vm8 = vcmask 392192  }
   0x2   :  { %382 = vmatpush.msk.msra.mxu3 %vm52_vm0, %v41_v0  ;;  %380 = vmatpush.msk.msra.mxu0 %vm52_vm0, %v40_v2  ;;  %v38_v3 = vld [vmem:[%s640_s1 + $0x10] sm:$0xff]  ;;  %v37_v4 = vld [vmem:[%s640_s1 + $0x8] sm:$0xff]  ;;  %v36_v5 = vld [vmem:[%s640_s1] sm:$0xff] }
   0x3   :  { %v116_v6 = vld [vmem:[%s641_s3 + $0x78] sm:$0xff]  ;;  %v35_v7 = vld [vmem:[%s642_s0] sm:$0xff]  ;;  %v115_v8 = vld [vmem:[%s641_s3 + $0x70] sm:$0xff] }
   0x4   :  { %93 = vmatpush.msra.mxu3 %v39_v1  ;;  %73 = vmatpush.msra.mxu0 %v38_v3  ;;  %v114_v9 = vld [vmem:[%s641_s3 + $0x68] sm:$0xff]  ;;  %v113_v11 = vld [vmem:[%s641_s3 + $0x60] sm:$0xff]  ;;  %v112_v12 = vld [vmem:[%s641_s3 + $0x58] sm:$0xff] }
   0x5   :  { %127 = vmatpush.msra.mxu2 %v116_v6  ;;  %v118_v10 = vld [vmem:[%s641_s3 + $0x88] sm:$0xff]  ;;  %v111_v13 = vld [vmem:[%s641_s3 + $0x50] sm:$0xff]  ;;  %v109_v15 = vld [vmem:[%s641_s3 + $0x40] sm:$0xff] }
   0x6   :  { %94 = vmatpush.msra.mxu3 %v37_v4  ;;  %74 = vmatpush.msra.mxu0 %v36_v5  ;;  %v110_v14 = vld [vmem:[%s641_s3 + $0x48] sm:$0xff]  ;;  %v108_v16 = vld [vmem:[%s641_s3 + $0x38] sm:$0xff]  ;;  %v107_v17 = vld [vmem:[%s641_s3 + $0x30] sm:$0xff] }
   0x7   :  { %383 = vmatmul.msk.f32.vlgmr.msra.gmra.mxu3 %vm48_vm1, %v35_v7  ;;  %381 = vmatmul.msk.f32.vlgmr.msra.gmra.mxu0 %vm48_vm1, %v35_v7  ;;  %v106_v18 = vld [vmem:[%s641_s3 + $0x28] sm:$0xff]  ;;  %v105_v19 = vld [vmem:[%s641_s3 + $0x20] sm:$0xff]  ;;  %v104_v20 = vld [vmem:[%s641_s3 + $0x18] sm:$0xff] }
   0x8   :  { %128 = vmatpush.msra.mxu2 %v115_v8  ;;  %161 = vmatpush.msrb.mxu3 %v118_v10  ;;  %v103_v21 = vld [vmem:[%s641_s3 + $0x10] sm:$0xff]  ;;  %v102_v22 = vld [vmem:[%s641_s3 + $0x8] sm:$0xff]  ;;  %v101_v23 = vld [vmem:[%s641_s3] sm:$0xff] }
   0x9   :  { %v117_v24 = vld [vmem:[%s641_s3 + $0x80] sm:$0xff]  ;;  %v187_v35 = vld [vmem:[%s645_s5 + $0x8] sm:$0xff]  ;;  %v255_v41 = vld [vmem:[%s646_s7 + $0x78] sm:$0xff] }
   0xa   :  { %129 = vmatpush.msra.mxu2 %v114_v9  ;;  %162 = vmatpush.msrb.mxu3 %v117_v24  ;;  %v42_v25 = vld [vmem:[%s644_s2] sm:$0x3]  ;;  %v254_v42 = vld [vmem:[%s646_s7 + $0x70] sm:$0xff]  ;;  %v253_v44 = vld [vmem:[%s646_s7 + $0x68] sm:$0xff] }
   0xb   :  { %v44_v26 = vperm.slane %v42_v25, 0  ;;  %v45_v29 = vperm.slane %v42_v25, 1  ;;  %v186_v34 = vld [vmem:[%s645_s5] sm:$0xff]  ;;  %233 = vmatpush.msrb.mxu0 %v187_v35  ;;  %261 = vmatpush.msra.mxu1 %v255_v41  ;;  %v257_v45 = vld [vmem:[%s646_s7 + $0x88] sm:$0xff]  ;;  %v251_v48 = vld [vmem:[%s646_s7 + $0x58] sm:$0xff] }
   0xc   :  { %130 = vmatpush.msra.mxu2 %v113_v11  ;;  %213 = vmatpush.msra.mxu3 %v186_v34  ;;  %v389_v36 = vld [vmem:[%s643_s4] ss:$0 sm:$0xff]  ;;  %v250_v49 = vld [vmem:[%s646_s7 + $0x50] sm:$0xff]  ;;  %v249_v50 = vld [vmem:[%s646_s7 + $0x48] sm:$0xff] }
   0xd   :  { %262 = vmatpush.msra.mxu1 %v254_v42  ;;  %v252_v47 = vld [vmem:[%s646_s7 + $0x60] sm:$0xff]  ;;  %v247_v54 = vld [vmem:[%s646_s7 + $0x38] sm:$0xff]  ;;  %v246_v55 = vld [vmem:[%s646_s7 + $0x30] sm:$0xff] }
   0xe   :  { %131 = vmatpush.msra.mxu2 %v112_v12  ;;  %v248_v52 = vld [vmem:[%s646_s7 + $0x40] sm:$0xff]  ;;  %v245_v2 = vld [vmem:[%s646_s7 + $0x28] sm:$0xff]  ;;  %v243_v5 = vld [vmem:[%s646_s7 + $0x18] sm:$0xff] }
   0xf   :  { %263 = vmatpush.msra.mxu1 %v253_v44  ;;  %v244_v3 = vld [vmem:[%s646_s7 + $0x20] sm:$0xff]  ;;  %v242_v6 = vld [vmem:[%s646_s7 + $0x10] sm:$0xff]  ;;  %v241_v7 = vld [vmem:[%s646_s7 + $0x8] sm:$0xff] }
  0x10   :  { %132 = vmatpush.msra.mxu2 %v111_v13  ;;  %v256_v4 = vld [vmem:[%s646_s7 + $0x80] sm:$0xff]  ;;  %v307_v9 = vld [vmem:[%s647_s8 + $0x28] sm:$0xff]  ;;  %v305_v11 = vld [vmem:[%s647_s8 + $0x18] sm:$0xff] }
  0x11   :  { %264 = vmatpush.msra.mxu1 %v252_v47  ;;  %v240_v8 = vld [vmem:[%s646_s7] sm:$0xff]  ;;  %326 = vmatpush.msra.mxu0 %v307_v9 }
  0x12   :  { %133 = vmatpush.msra.mxu2 %v110_v14  ;;  %v306_v10 = vld [vmem:[%s647_s8 + $0x20] sm:$0xff] }
  0x13   :  { %265 = vmatpush.msra.mxu1 %v251_v48  ;;  %327 = vmatpush.msra.mxu0 %v306_v10  ;;  %v188_v12 = vld [vmem:[%s648_s6] sm:$0x3] }
  0x14   :  { %134 = vmatpush.msra.mxu2 %v109_v15  ;;  %v191_v13 = vperm.slane %v188_v12, 1 }
  0x15   :  { %266 = vmatpush.msra.mxu1 %v250_v49  ;;  %328 = vmatpush.msra.mxu0 %v305_v11 }
  0x16   :  { %135 = vmatpush.msra.mxu2 %v108_v16 }
  0x17   :  { %267 = vmatpush.msra.mxu1 %v249_v50 }
  0x18   :  { %136 = vmatpush.msra.mxu2 %v107_v17  ;;  %v190_v17 = vperm.slane %v188_v12, 0 }
  0x19   :  { %268 = vmatpush.msra.mxu1 %v248_v52 }
  0x1a   :  { %137 = vmatpush.msra.mxu2 %v106_v18 }
  0x1b   :  { %269 = vmatpush.msra.mxu1 %v247_v54 }
  0x1c   :  { %138 = vmatpush.msra.mxu2 %v105_v19 }
  0x1d   :  { %270 = vmatpush.msra.mxu1 %v246_v55 }
  0x1e   :  { %139 = vmatpush.msra.mxu2 %v104_v20 }
  0x1f   :  { %271 = vmatpush.msra.mxu1 %v245_v2 }
  0x20   :  { %140 = vmatpush.msra.mxu2 %v103_v21  ;;  %v304_v21 = vld [vmem:[%s647_s8 + $0x10] sm:$0xff] }
  0x21   :  { %272 = vmatpush.msra.mxu1 %v244_v3  ;;  %329 = vmatpush.msra.mxu0 %v304_v21 }
  0x22   :  { %141 = vmatpush.msra.mxu2 %v102_v22  ;;  %v303_v22 = vld [vmem:[%s647_s8 + $0x8] sm:$0xff] }
  0x23   :  { %273 = vmatpush.msra.mxu1 %v243_v5  ;;  %330 = vmatpush.msra.mxu0 %v303_v22 }
  0x24   :  { %142 = vmatpush.msra.mxu2 %v101_v23  ;;  %v302_v23 = vld [vmem:[%s647_s8] sm:$0xff] }
  0x25   :  { %274 = vmatpush.msra.mxu1 %v242_v6  ;;  %331 = vmatpush.msra.mxu0 %v302_v23 }
  0x27   :  { %275 = vmatpush.msra.mxu1 %v241_v7 }
  0x29   :  { %276 = vmatpush.msra.mxu1 %v240_v8 }
  0x84   :  { %v76_v27 = vpop.f32.mrf.mxu0 }
  0x85   :  { %v534_v28 = vadd.f32 %v76_v27, %v44_v26 }
  0x87   :  { %v99_v30 = vmax.f32 %v534_v28, 0.0 }
  0x89   :  { %143 = vmatmul.f32.vlgmr.msra.gmra.mxu2 %v99_v30 }
  0x8a   :  { %v96_v31 = vpop.f32.mrf.mxu3 }
  0x8b   :  { %v537_v32 = vadd.f32 %v96_v31, %v45_v29 }
  0x8d   :  { %v100_v33 = vmax.f32 %v537_v32, 0.0 }
  0x8f   :  { %384 = vmatmul.msk.f32.vlgmr.msrb.gmra.mxu3 %vm123_vm2, %v100_v33 }
  0x90   :  { %295 = vmatpush.msrb.mxu3 %v257_v45 }
  0x92   :  { %296 = vmatpush.msrb.mxu3 %v256_v4 }
 0x10c   :  { %v144_v37 = vpop.f32.mrf.mxu2 }
 0x10d   :  { %v145_v38 = vadd.f32 %v389_v36, %v144_v37  ;;  %v336_v37 = vlaneseq }
 0x112   :  { %v164_v39 = vpop.f32.mrf.mxu3 }
 0x113   :  { %v165_v40 = vadd.f32 %v164_v39, %v145_v38  ;;  %v337_v39 = vand.u32 127, %v336_v37 }
 0x115   :  { %v167_v43 = vsub.f32 0.0, %v165_v40  ;;  %vm342_vm9 = vcmp.ge.s32.totalorder %v337_v39, 6  ;;  %vm343_vm10 = vcmp.lt.s32.totalorder %v337_v39, 10  ;;  %vm339_vm12 = vcmp.ge.s32.totalorder %v337_v39, 2 }
 0x116   :  { %vm340_vm13 = vcmp.lt.s32.totalorder %v337_v39, 6  ;;  %vm631_vm14 = vmand %vm342_vm9, %vm343_vm10 }
 0x117   :  { %v168_v46 = vmul.f32 1.442695, %v167_v43  ;;  %vm341_vm1 = vmand %vm339_vm12, %vm340_vm13 }
 0x119   :  { %391 = vpow2.f32 %v168_v46 }
 0x11f   :  { %v392_v51 = vpop.eup %391 }
 0x120   :  { %v170_v53 = vadd.f32 1.0, %v392_v51 }
 0x122   :  { %393 = vrcp.f32 %v170_v53  ;;  %v182_v59 = vand.u32 2147483648, %v170_v53  ;;  %v180_v61 = vand.u32 2147483647, %v170_v53  ;;  %vm176_vm4 = vweird.f32 %v170_v53 }
 0x124   :  { %v183_v63 = vor.u32 1.1754944e-38, %v182_v59  ;;  %vm181_vm7 = vcmp.eq.f32.partialorder %v180_v61, 8.507059e+37 }
 0x128   :  { %v394_v56 = vpop.eup %393 }
 0x129   :  { %v172_v57 = vmul.f32 %v394_v56, %v170_v53  ;;  %vm177_vm3 = vweird.f32 %v394_v56 }
 0x12a   :  { %vm178_vm5 = vmor %vm176_vm4, %vm177_vm3  ;;  %vm338_vm3 = vcmp.lt.s32.totalorder %v337_v39, 2 }
 0x12b   :  { %v173_v58 = vsub.f32 1.0, %v172_v57 }
 0x12d   :  { %v174_v60 = vmul.f32 %v394_v56, %v173_v58 }
 0x12f   :  { %v175_v62 = vadd.f32 %v394_v56, %v174_v60 }
 0x131   :  { %v179_v0 = vsel %vm178_vm5, %v394_v56, %v175_v62 }
 0x132   :  { %v184_v1 = vsel %vm181_vm7, %v183_v63, %v179_v0 }
 0x133   :  { %385 = vmatmul.msk.f32.vlgmr.msra.gmra.mxu3 %vm194_vm6, %v184_v1  ;;  %386 = vmatmul.msk.f32.vlgmr.msrb.gmra.mxu0 %vm194_vm6, %v184_v1 }
 0x1b0   :  { %v235_v14 = vpop.f32.mrf.mxu0 }
 0x1b1   :  { %v236_v15 = vadd.f32 %v235_v14, %v191_v13 }
 0x1b3   :  { %v239_v16 = vmul.f32 %v236_v15, %v537_v32 }
 0x1b5   :  { %387 = vmatmul.msk.f32.vlgmr.msrb.gmra.mxu3 %vm123_vm2, %v239_v16 }
 0x1b6   :  { %v215_v18 = vpop.f32.mrf.mxu3 }
 0x1b7   :  { %v216_v19 = vadd.f32 %v215_v18, %v190_v17 }
 0x1b9   :  { %v238_v20 = vmul.f32 %v216_v19, %v534_v28  ;;  %v390_v28 = vld [vmem:[%s649_s9] ss:$0 sm:$0xff] }
 0x1bb   :  { %277 = vmatmul.f32.vlgmr.msra.gmra.mxu1 %v238_v20 }
 0x238   :  { %v278_v24 = vpop.f32.mrf.mxu1  ;;  %v298_v25 = vpop.f32.mrf.mxu3 }
 0x239   :  { %v299_v26 = vadd.f32 %v298_v25, %v278_v24 }
 0x23b   :  { %v301_v27 = vmax.f32 %v299_v26, 0.0 }
 0x23d   :  { %388 = vmatmul.msk.f32.vlgmr.msra.gmra.mxu0 %vm312_vm8, %v301_v27 }
 0x2ba   :  { %v333_v29 = vpop.f32.mrf.mxu0 }
 0x2bb   :  { %v334_v30 = vadd.f32 %v390_v28, %v333_v29 }
 0x2bd   :  { %v345_v31 = vsub.f32 0.0, %v334_v30  ;;  %v367_v33 = vmul.f32 1.442695, %v334_v30  ;;  %v365_v49 = vmax.f32 %v334_v30, 0.0 }
 0x2bf   :  { %v346_v32 = vmul.f32 1.442695, %v345_v31  ;;  %v366_v55 = vmin.f32 %v365_v49, 1.0 }
 0x2c1   :  { %395 = vpow2.f32 %v346_v32 }
 0x2c2   :  { %397 = vpow2.f32 %v367_v33 }
 0x2c7   :  { %v396_v34 = vpop.eup %395 }
 0x2c8   :  { %v348_v35 = vadd.f32 1.0, %v396_v34  ;;  %v398_v36 = vpop.eup %397 }
 0x2c9   :  { %v369_v38 = vadd.f32 0.0001, %v398_v36 }
 0x2ca   :  { %399 = vrcp.f32 %v348_v35  ;;  %v360_v44 = vand.u32 2147483648, %v348_v35  ;;  %v358_v46 = vand.u32 2147483647, %v348_v35  ;;  %vm354_vm15 = vweird.f32 %v348_v35 }
 0x2cb   :  { %v370_v42 = vmax.f32 %v369_v38, 0.0 }
 0x2cc   :  { %v361_v51 = vor.u32 1.1754944e-38, %v360_v44  ;;  %vm359_vm2 = vcmp.eq.f32.partialorder %v358_v46, 8.507059e+37 }
 0x2cd   :  { %v371_v47 = vmin.f32 %v370_v42, 1.0 }
 0x2cf   :  { %v372_v53 = vsel %vm631_vm14, %v371_v47, 0.0 }
 0x2d0   :  { %v400_v40 = vpop.eup %399  ;;  %v373_v57 = vsel %vm341_vm1, %v366_v55, %v372_v53 }
 0x2d1   :  { %v350_v41 = vmul.f32 %v400_v40, %v348_v35  ;;  %vm355_vm11 = vweird.f32 %v400_v40 }
 0x2d2   :  { %vm356_vm0 = vmor %vm354_vm15, %vm355_vm11 }
 0x2d3   :  { %v351_v43 = vsub.f32 1.0, %v350_v41 }
 0x2d5   :  { %v352_v45 = vmul.f32 %v400_v40, %v351_v43 }
 0x2d7   :  { %v353_v50 = vadd.f32 %v400_v40, %v352_v45 }
 0x2d9   :  { %v357_v52 = vsel %vm356_vm0, %v400_v40, %v353_v50 }
 0x2da   :  { %v362_v54 = vsel %vm359_vm2, %v361_v51, %v357_v52 }
 0x2db   :  { %v364_v56 = vadd.f32 0.0001, %v362_v54 }
 0x2dd   :  { %v374_v58 = vsel %vm338_vm3, %v364_v56, %v373_v57 }
 0x2de   :  { %375 = vst [vmem:[%s650_s10] sm:$0xff] %v374_v58 }

</bundles_post_ra>
